<compile_context>
chip_gen: v7x
topology: tpu7x:2x2x1
jax: 0.10.0
libtpu: 0.0.40
codegen_flags: <defaults>
</compile_context>

<pallas_src>
import functools

import jax
import jax.numpy as jnp
from jax.experimental import pallas as pl
from jax.experimental.pallas import tpu as pltpu

HIDDEN = 32
LANE = 128          # padded state / hidden / action width (lane-dense)
SUBLANE = 8         # f32 sublane count
TB_MAX = 256        # batch-tile rows per grid step (fits VMEM on v5e/v6e/v7x)
NEG_PAD = -1e30     # bias padding for unused action lanes -> exp() == 0


def _round_up(n, m):
    return ((n + m - 1) // m) * m


def _pi_mlp_kernel(x_ref, w_ref, b_ref, out_ref):
    """Fused padded 3-layer MLP + softmax on one (TB, 128) batch tile.

    x_ref   : (TB, 128)      zero-padded states
    w_ref   : (3, 128, 128)  zero-padded [W1 | W2 | W3], stored in x out layout
    b_ref   : (3, 128)       zero-padded biases; row 2 padded with -1e30
    out_ref : (TB, 128)      softmax probs; lanes >= num_actions are exactly 0
    """
    x = x_ref[...]

    # Layer 1: Linear + ReLU  (MXU matmul, VPU max)
    h1 = jnp.dot(x, w_ref[0], preferred_element_type=jnp.float32)
    h1 = jnp.maximum(h1 + b_ref[0:1, :], 0.0)

    # Layer 2: Linear + ReLU
    h2 = jnp.dot(h1, w_ref[1], preferred_element_type=jnp.float32)
    h2 = jnp.maximum(h2 + b_ref[1:2, :], 0.0)

    # Layer 3: Linear (logits); padded action lanes end up at ~-1e30
    logits = jnp.dot(h2, w_ref[2], preferred_element_type=jnp.float32)
    logits = logits + b_ref[2:3, :]

    # Numerically-stable softmax over the action (last / lane) axis.
    m = jnp.max(logits, axis=-1, keepdims=True)
    e = jnp.exp(logits - m)                        # padded lanes underflow to 0
    denom = jnp.sum(e, axis=-1, keepdims=True)
    inv = 1.0 / denom                              # exact f32 divide, 1 per row
    out_ref[...] = e * inv                         # per-lane VPU multiply


@functools.partial(jax.jit, static_argnames=("num_actions",))
def pi_forward(x, w_packed, b_packed, *, num_actions):
    """probs = softmax(relu(relu(x@W1+b1)@W2+b2)@W3+b3), softmax over actions."""
    batch, state_dims = x.shape

    # Batch tile: multiple of 8 sublanes, capped at TB_MAX.
    tb = min(TB_MAX, _round_up(batch, SUBLANE))
    batch_padded = _round_up(batch, tb)

    # Zero-pad states to (batch_padded, 128): lane-dense loads, full sublanes.
    x_padded = jnp.zeros((batch_padded, LANE), jnp.float32)
    x_padded = x_padded.at[:batch, :state_dims].set(x.astype(jnp.float32))

    grid = (batch_padded // tb,)

    out_padded = pl.pallas_call(
        _pi_mlp_kernel,
        out_shape=jax.ShapeDtypeStruct((batch_padded, LANE), jnp.float32),
        grid=grid,
        in_specs=[
            pl.BlockSpec((tb, LANE), lambda i: (i, 0)),          # x: tiled
            pl.BlockSpec((3, LANE, LANE), lambda i: (0, 0, 0)),  # W: resident
            pl.BlockSpec((3, LANE), lambda i: (0, 0)),           # b: resident
        ],
        out_specs=pl.BlockSpec((tb, LANE), lambda i: (i, 0)),
        compiler_params=pltpu.CompilerParams(
            dimension_semantics=("parallel",)),  # shards across multi-TC chips
    )(x_padded, w_packed, b_packed)

    return out_padded[:batch, :num_actions]


def init_params(key, state_dims, num_actions):
    """Deterministic init mimicking torch.nn.Linear default U[-1/sqrt(fan_in), +]."""
    def linear_init(k, fan_in, fan_out):
        kw, kb = jax.random.split(k)
        bound = 1.0 / jnp.sqrt(jnp.float32(fan_in))
        w = jax.random.uniform(kw, (fan_in, fan_out), jnp.float32, -bound, bound)
        b = jax.random.uniform(kb, (fan_out,), jnp.float32, -bound, bound)
        return w, b

    k1, k2, k3 = jax.random.split(key, 3)
    w1, b1 = linear_init(k1, state_dims, HIDDEN)
    w2, b2 = linear_init(k2, HIDDEN, HIDDEN)
    w3, b3 = linear_init(k3, HIDDEN, num_actions)
    return (w1, b1, w2, b2, w3, b3)


def pack_params(params, state_dims, num_actions):
    """Pack 3 Linear layers into one lane-dense weight slab + one bias slab.

    Weights are stored [in_features, out_features] (transpose of PyTorch's
    Linear.weight), zero-padded to 128x128.  Bias row for layer 3 is padded
    with -1e30 so padded action lanes vanish under softmax.
    """
    w1, b1, w2, b2, w3, b3 = params

    w_packed = jnp.zeros((3, LANE, LANE), jnp.float32)
    w_packed = w_packed.at[0, :state_dims, :HIDDEN].set(w1)
    w_packed = w_packed.at[1, :HIDDEN, :HIDDEN].set(w2)
    w_packed = w_packed.at[2, :HIDDEN, :num_actions].set(w3)

    b_packed = jnp.zeros((3, LANE), jnp.float32)
    b_packed = b_packed.at[0, :HIDDEN].set(b1)
    b_packed = b_packed.at[1, :HIDDEN].set(b2)
    b_packed = b_packed.at[2, :].set(NEG_PAD)
    b_packed = b_packed.at[2, :num_actions].set(b3)
    return w_packed, b_packed


if __name__ == "__main__":
    state_dims = 4
    num_actions = 4
    batch = 2

    key = jax.random.PRNGKey(0)
    k_params, k_x = jax.random.split(key)

    params = init_params(k_params, state_dims, num_actions)
    w_packed, b_packed = pack_params(params, state_dims, num_actions)
    x = jax.random.normal(k_x, (batch, state_dims), jnp.float32)

    probs = pi_forward(x, w_packed, b_packed, num_actions=num_actions)
    probs = jax.block_until_ready(probs)

    # Reference check in plain JAX (unpadded math).
    w1, b1, w2, b2, w3, b3 = params
    h1 = jnp.maximum(x @ w1 + b1, 0.0)
    h2 = jnp.maximum(h1 @ w2 + b2, 0.0)
    logits = h2 @ w3 + b3
    ref = jax.nn.softmax(logits, axis=-1)

    assert probs.shape == (batch, num_actions)
    # Exact-divide normalization: rows sum to 1 up to f32 rounding.
    assert jnp.allclose(jnp.sum(probs, axis=-1), 1.0, atol=1e-4)
    # MXU default-precision matmul vs XLA reference: allow small tolerance.
    assert jnp.allclose(probs, ref, atol=2e-3)

    print("KERNEL_OK")
</pallas_src>

<mosaic_0001>
module attributes {stable_mosaic.version = 11 : i64} {
  func.func @_pi_mlp_kernel(%arg0: i32, %arg1: memref<8x128xf32, #tpu.memory_space<vmem>>, %arg2: memref<3x128x128xf32, #tpu.memory_space<vmem>>, %arg3: memref<3x128xf32, #tpu.memory_space<vmem>>, %arg4: memref<8x128xf32, #tpu.memory_space<vmem>>) attributes {dimension_semantics = [#tpu.dimension_semantics<parallel>], iteration_bounds = array<i64: 1>, scalar_prefetch = 0 : i64, scratch_operands = 0 : i64, tpu.core_type = #tpu.core_type<tc>, window_params = [{transform_indices = @transform_0, window_bounds = array<i64: 8, 128>}, {pipeline_mode = #tpu.pipeline_mode<synchronous>, transform_indices = @transform_1, window_bounds = array<i64: 3, 128, 128>}, {pipeline_mode = #tpu.pipeline_mode<synchronous>, transform_indices = @transform_2, window_bounds = array<i64: 3, 128>}, {transform_indices = @transform_3, window_bounds = array<i64: 8, 128>}]} {
    %c0 = arith.constant 0 : index
    %c0_0 = arith.constant 0 : index
    %0 = vector.load %arg1[%c0, %c0_0] : memref<8x128xf32, #tpu.memory_space<vmem>>, vector<8x128xf32>
    %c0_1 = arith.constant 0 : index
    %c0_2 = arith.constant 0 : index
    %c0_3 = arith.constant 0 : index
    %1 = vector.load %arg2[%c0_1, %c0_2, %c0_3] : memref<3x128x128xf32, #tpu.memory_space<vmem>>, vector<1x128x128xf32>
    %2 = vector.shape_cast %1 : vector<1x128x128xf32> to vector<128x128xf32>
    %cst = arith.constant dense<0.000000e+00> : vector<8x128xf32>
    %3 = tpu.matmul %0, %2, %cst {dimension_numbers = #tpu.dot_dimension_numbers<[1], [0], [0], [1], [0, 0, 1, 1], [], []>} : vector<8x128xf32>, vector<128x128xf32>, vector<8x128xf32> -> vector<8x128xf32>
    %c0_4 = arith.constant 0 : index
    %c0_5 = arith.constant 0 : index
    %4 = vector.load %arg3[%c0_4, %c0_5] : memref<3x128xf32, #tpu.memory_space<vmem>>, vector<1x128xf32>
    %5 = vector.broadcast %4 : vector<1x128xf32> to vector<8x128xf32>
    %6 = arith.addf %3, %5 : vector<8x128xf32>
    %cst_6 = arith.constant 0.000000e+00 : f32
    %7 = vector.broadcast %cst_6 : f32 to vector<8x128xf32>
    %8 = arith.maximumf %6, %7 : vector<8x128xf32>
    %c1 = arith.constant 1 : index
    %c0_7 = arith.constant 0 : index
    %c0_8 = arith.constant 0 : index
    %9 = vector.load %arg2[%c1, %c0_7, %c0_8] : memref<3x128x128xf32, #tpu.memory_space<vmem>>, vector<1x128x128xf32>
    %10 = vector.shape_cast %9 : vector<1x128x128xf32> to vector<128x128xf32>
    %cst_9 = arith.constant dense<0.000000e+00> : vector<8x128xf32>
    %11 = tpu.matmul %8, %10, %cst_9 {dimension_numbers = #tpu.dot_dimension_numbers<[1], [0], [0], [1], [0, 0, 1, 1], [], []>} : vector<8x128xf32>, vector<128x128xf32>, vector<8x128xf32> -> vector<8x128xf32>
    %c1_10 = arith.constant 1 : index
    %c0_11 = arith.constant 0 : index
    %12 = vector.load %arg3[%c1_10, %c0_11] : memref<3x128xf32, #tpu.memory_space<vmem>>, vector<1x128xf32>
    %13 = vector.broadcast %12 : vector<1x128xf32> to vector<8x128xf32>
    %14 = arith.addf %11, %13 : vector<8x128xf32>
    %cst_12 = arith.constant 0.000000e+00 : f32
    %15 = vector.broadcast %cst_12 : f32 to vector<8x128xf32>
    %16 = arith.maximumf %14, %15 : vector<8x128xf32>
    %c2 = arith.constant 2 : index
    %c0_13 = arith.constant 0 : index
    %c0_14 = arith.constant 0 : index
    %17 = vector.load %arg2[%c2, %c0_13, %c0_14] : memref<3x128x128xf32, #tpu.memory_space<vmem>>, vector<1x128x128xf32>
    %18 = vector.shape_cast %17 : vector<1x128x128xf32> to vector<128x128xf32>
    %cst_15 = arith.constant dense<0.000000e+00> : vector<8x128xf32>
    %19 = tpu.matmul %16, %18, %cst_15 {dimension_numbers = #tpu.dot_dimension_numbers<[1], [0], [0], [1], [0, 0, 1, 1], [], []>} : vector<8x128xf32>, vector<128x128xf32>, vector<8x128xf32> -> vector<8x128xf32>
    %c2_16 = arith.constant 2 : index
    %c0_17 = arith.constant 0 : index
    %20 = vector.load %arg3[%c2_16, %c0_17] : memref<3x128xf32, #tpu.memory_space<vmem>>, vector<1x128xf32>
    %21 = vector.broadcast %20 : vector<1x128xf32> to vector<8x128xf32>
    %22 = arith.addf %19, %21 : vector<8x128xf32>
    %cst_18 = arith.constant dense<0xFF800000> : vector<8xf32>
    %23 = vector.multi_reduction <maximumf>, %22, %cst_18 [1] : vector<8x128xf32> to vector<8xf32>
    %24 = vector.shape_cast %23 : vector<8xf32> to vector<8x1xf32>
    %25 = vector.broadcast %24 : vector<8x1xf32> to vector<8x128xf32>
    %26 = arith.subf %22, %25 : vector<8x128xf32>
    %27 = math.exp %26 : vector<8x128xf32>
    %cst_19 = arith.constant dense<0.000000e+00> : vector<8xf32>
    %28 = vector.multi_reduction <add>, %27, %cst_19 [1] : vector<8x128xf32> to vector<8xf32>
    %29 = vector.shape_cast %28 : vector<8xf32> to vector<8x1xf32>
    %cst_20 = arith.constant 1.000000e+00 : f32
    %30 = vector.broadcast %cst_20 : f32 to vector<8x1xf32>
    %31 = arith.divf %30, %29 : vector<8x1xf32>
    %32 = vector.broadcast %31 : vector<8x1xf32> to vector<8x128xf32>
    %33 = arith.mulf %27, %32 : vector<8x128xf32>
    %c0_21 = arith.constant 0 : index
    %c0_22 = arith.constant 0 : index
    %34 = vector.load %arg4[%c0_21, %c0_22] : memref<8x128xf32, #tpu.memory_space<vmem>>, vector<8x128xf32>
    tpu.vector_store %arg4[%c0_21, %c0_22], %33 {strides = array<i32>} : memref<8x128xf32, #tpu.memory_space<vmem>>, vector<8x128xf32>,
    return
  }
  func.func @transform_0(%arg0: i32) -> (i32, i32) {
    %c0_i32 = arith.constant 0 : i32
    %c0_i32_0 = arith.constant 0 : i32
    return %arg0, %c0_i32 : i32, i32
  }
  func.func @transform_1(%arg0: i32) -> (i32, i32, i32) {
    %c0_i32 = arith.constant 0 : i32
    %c0_i32_0 = arith.constant 0 : i32
    %c0_i32_1 = arith.constant 0 : i32
    %c0_i32_2 = arith.constant 0 : i32
    return %c0_i32, %c0_i32_0, %c0_i32_1 : i32, i32, i32
  }
  func.func @transform_2(%arg0: i32) -> (i32, i32) {
    %c0_i32 = arith.constant 0 : i32
    %c0_i32_0 = arith.constant 0 : i32
    %c0_i32_1 = arith.constant 0 : i32
    return %c0_i32, %c0_i32_0 : i32, i32
  }
  func.func @transform_3(%arg0: i32) -> (i32, i32) {
    %c0_i32 = arith.constant 0 : i32
    %c0_i32_0 = arith.constant 0 : i32
    return %arg0, %c0_i32 : i32, i32
  }
}

</mosaic_0001>

<bundles_post_ra>
// kernel: pi_forward.1
= control target key start
LH: loop header
LB: loop body
LE: loop exit
PB: predicated region body
PF: predicated region fallthrough
CT: control target
= control target key end

     0   :  { %8 = vsyncpa [#allocation3], 0  ;;  %s587_s12 = smov [#allocation2]   ;;  %s670_s0 = inlined_call_operand.vmem [shape: f32[8,128], index: 0, kind: input, shape index: {}]   ;;  %s671_s1 = inlined_call_operand.hbm [shape: f32[3,128,128], index: 1, kind: input, shape index: {}]   ;;  %s672_s2 = inlined_call_operand.vmem [shape: f32[3,128], index: 2, kind: input, shape index: {}]   ;;  %s673_s3 = inlined_call_operand.vmem [shape: f32[8,128], index: 3, kind: output, shape index: {}]  }
   0x1   :  { %s16_s13 = sshll.u32 %s587_s12, 4  ;;  %s563_s16 = scalar_lea.hbm %s671_s1, 6144  ;;  %s17_s13 = int_to_ptr.vmem [resolvable:$true] %s16_s13 }
   0x2   :  { %p564_p0 = scmp.ne.s32.totalorder %s671_s1, %s563_s16  ;;  %p567_p1 = scmp.lt.u32.totalorder %s563_s16, %s671_s1 }
   0x4   :  { %p569_p2 = pnand %p567_p1, %p564_p0 }
   0x6   :  { %572 = shalt.err (!%p569_p2)
}
   0x7   :  { %s573_s21 = scalar_lea.vmem %s17_s13, 6144  ;;  %p578_p4 = scmp.lt.s32.totalorder %s17_s13, %s17_s13 }
   0x8   :  { %p574_p3 = scmp.ne.s32.totalorder %s17_s13, %s573_s21  ;;  %p579_p5 = scmp.lt.s32.totalorder %s573_s21, %s573_s21 }
   0xa   :  { %p580_p6 = por %p579_p5, %p578_p4 }
   0xc   :  { %p581_p7 = pnand %p580_p6, %p574_p3 }
   0xe   :  { %584 = shalt.err (!%p581_p7)
}
   0xf   :  { %s588_s22 = smov 128   ;;  %s589_s23 = smov 8  }
  0x10   :  { %22 = dma.hbm_to_vmem [thread:$0]  %s671_s1, 6144, %s17_s13, [#allocation3], %s588_s22, %s588_s22, %s589_s23  }
  0x11   :  { %585 = dma.done.wait [#allocation3], 6144  }
  0x12   :  { %586 = vsyncadd [#allocation3], 4294961152  ;;  %v590_v0 = vmov 0.0|0.0   ;;  %vm591_vm0 = vmmov 0   ;;  %v592_v1 = vmov 0.0   ;;  %v29_v2 = vld [vmem:[#allocation2] sm:$0xff] }
  0x13   :  { %481 = vmatprep.subr.bf16.mxu0 %v590_v0  ;;  %408 = vmatprep.mubr.msk.f32.mxu0 %vm591_vm0, %v592_v1  ;;  %v30_v3 = vld [vmem:[#allocation2 + $0x8] sm:$0xff]  ;;  %v31_v4 = vld [vmem:[#allocation2 + $0x10] sm:$0xff]  ;;  %v32_v6 = vld [vmem:[#allocation2 + $0x18] sm:$0xff] }
  0x14   :  { %505 = vmatprep.subr.bf16.mxu1 %v590_v0  ;;  %443 = vmatprep.mubr.msk.f32.mxu1 %vm591_vm0, %v592_v1  ;;  %v482_v5 = vpack.c.bf16 %v30_v3, %v29_v2  ;;  %v485_v7 = vpack.c.bf16 %v32_v6, %v31_v4  ;;  %v33_v8 = vld [vmem:[#allocation2 + $0x20] sm:$0xff]  ;;  %v34_v9 = vld [vmem:[#allocation2 + $0x28] sm:$0xff]  ;;  %v124_v12 = vld [vmem:[#allocation2 + $0x90] sm:$0xff] }
  0x15   :  { %v122_v10 = vld [vmem:[#allocation2 + $0x80] sm:$0xff]  ;;  %v123_v11 = vld [vmem:[#allocation2 + $0x88] sm:$0xff]  ;;  %v125_v13 = vld [vmem:[#allocation2 + $0x98] sm:$0xff]  ;;  %v488_v14 = vpack.c.bf16 %v34_v9, %v33_v8 }
  0x16   :  { %483 = vmatpush3.bf16.msra.mxu0 %v482_v5  ;;  %v506_v15 = vpack.c.bf16 %v123_v11, %v122_v10  ;;  %v35_v16 = vld [vmem:[#allocation2 + $0x30] sm:$0xff]  ;;  %v36_v17 = vld [vmem:[#allocation2 + $0x38] sm:$0xff]  ;;  %v509_v18 = vpack.c.bf16 %v125_v13, %v124_v12  ;;  %v126_v19 = vld [vmem:[#allocation2 + $0xa0] sm:$0xff] }
  0x17   :  { %484 = vmatprep.subr.bf16.mxu0 %v590_v0  ;;  %v127_v20 = vld [vmem:[#allocation2 + $0xa8] sm:$0xff]  ;;  %v491_v21 = vpack.c.bf16 %v36_v17, %v35_v16  ;;  %v37_v22 = vld [vmem:[#allocation2 + $0x40] sm:$0xff]  ;;  %v128_v25 = vld [vmem:[#allocation2 + $0xb0] sm:$0xff] }
  0x18   :  { %507 = vmatpush3.bf16.msra.mxu1 %v506_v15  ;;  %v38_v23 = vld [vmem:[#allocation2 + $0x48] sm:$0xff]  ;;  %v512_v24 = vpack.c.bf16 %v127_v20, %v126_v19  ;;  %v129_v26 = vld [vmem:[#allocation2 + $0xb8] sm:$0xff]  ;;  %v39_v28 = vld [vmem:[#allocation2 + $0x50] sm:$0xff] }
  0x19   :  { %508 = vmatprep.subr.bf16.mxu1 %v590_v0  ;;  %v494_v27 = vpack.c.bf16 %v38_v23, %v37_v22  ;;  %v40_v29 = vld [vmem:[#allocation2 + $0x58] sm:$0xff]  ;;  %v515_v30 = vpack.c.bf16 %v129_v26, %v128_v25  ;;  %v130_v31 = vld [vmem:[#allocation2 + $0xc0] sm:$0xff]  ;;  %v131_v32 = vld [vmem:[#allocation2 + $0xc8] sm:$0xff] }
  0x1a   :  { %486 = vmatpush3.bf16.msra.mxu0 %v485_v7  ;;  %v497_v33 = vpack.c.bf16 %v40_v29, %v39_v28  ;;  %v41_v34 = vld [vmem:[#allocation2 + $0x60] sm:$0xff]  ;;  %v42_v35 = vld [vmem:[#allocation2 + $0x68] sm:$0xff]  ;;  %v518_v36 = vpack.c.bf16 %v131_v32, %v130_v31  ;;  %v132_v37 = vld [vmem:[#allocation2 + $0xd0] sm:$0xff] }
  0x1b   :  { %487 = vmatprep.subr.bf16.mxu0 %v590_v0  ;;  %v133_v38 = vld [vmem:[#allocation2 + $0xd8] sm:$0xff]  ;;  %v500_v39 = vpack.c.bf16 %v42_v35, %v41_v34  ;;  %v43_v40 = vld [vmem:[#allocation2 + $0x70] sm:$0xff]  ;;  %v134_v43 = vld [vmem:[#allocation2 + $0xe0] sm:$0xff] }
  0x1c   :  { %510 = vmatpush3.bf16.msra.mxu1 %v509_v18  ;;  %v44_v41 = vld [vmem:[#allocation2 + $0x78] sm:$0xff]  ;;  %v521_v42 = vpack.c.bf16 %v133_v38, %v132_v37  ;;  %v135_v44 = vld [vmem:[#allocation2 + $0xe8] sm:$0xff]  ;;  %v28_v47 = vld [vmem:[%s670_s0] sm:$0xff] }
  0x1d   :  { %511 = vmatprep.subr.bf16.mxu1 %v590_v0  ;;  %v503_v45 = vpack.c.bf16 %v44_v41, %v43_v40  ;;  %v524_v46 = vpack.c.bf16 %v135_v44, %v134_v43  ;;  %v136_v48 = vld [vmem:[#allocation2 + $0xf0] sm:$0xff]  ;;  %v137_v49 = vld [vmem:[#allocation2 + $0xf8] sm:$0xff]  ;;  %v215_v51 = vld [vmem:[#allocation2 + $0x100] sm:$0xff] }
  0x1e   :  { %489 = vmatpush3.bf16.msra.mxu0 %v488_v14  ;;  %v527_v50 = vpack.c.bf16 %v137_v49, %v136_v48  ;;  %v216_v52 = vld [vmem:[#allocation2 + $0x108] sm:$0xff]  ;;  %v217_v53 = vld [vmem:[#allocation2 + $0x110] sm:$0xff]  ;;  %v218_v55 = vld [vmem:[#allocation2 + $0x118] sm:$0xff] }
  0x1f   :  { %490 = vmatprep.subr.bf16.mxu0 %v590_v0  ;;  %v530_v54 = vpack.c.bf16 %v216_v52, %v215_v51  ;;  %v533_v56 = vpack.c.bf16 %v218_v55, %v217_v53  ;;  %v219_v57 = vld [vmem:[#allocation2 + $0x120] sm:$0xff]  ;;  %v220_v58 = vld [vmem:[#allocation2 + $0x128] sm:$0xff]  ;;  %v221_v60 = vld [vmem:[#allocation2 + $0x130] sm:$0xff] }
  0x20   :  { %513 = vmatpush3.bf16.msra.mxu1 %v512_v24  ;;  %v536_v59 = vpack.c.bf16 %v220_v58, %v219_v57  ;;  %v222_v61 = vld [vmem:[#allocation2 + $0x138] sm:$0xff]  ;;  %v223_v63 = vld [vmem:[#allocation2 + $0x140] sm:$0xff]  ;;  %v225_v3 = vld [vmem:[#allocation2 + $0x150] sm:$0xff] }
  0x21   :  { %514 = vmatprep.subr.bf16.mxu1 %v590_v0  ;;  %v539_v62 = vpack.c.bf16 %v222_v61, %v221_v60  ;;  %v226_v4 = vld [vmem:[#allocation2 + $0x158] sm:$0xff]  ;;  %v227_v6 = vld [vmem:[#allocation2 + $0x160] sm:$0xff]  ;;  %v228_v7 = vld [vmem:[#allocation2 + $0x168] sm:$0xff] }
  0x22   :  { %492 = vmatpush3.bf16.msra.mxu0 %v491_v21  ;;  %v545_v5 = vpack.c.bf16 %v226_v4, %v225_v3  ;;  %v548_v8 = vpack.c.bf16 %v228_v7, %v227_v6  ;;  %v322_v9 = vld [vmem:[%s672_s2] ss:$0 sm:$0xff]  ;;  %v229_v14 = vld [vmem:[#allocation2 + $0x170] sm:$0xff]  ;;  %v230_v15 = vld [vmem:[#allocation2 + $0x178] sm:$0xff] }
  0x23   :  { %493 = vmatprep.subr.bf16.mxu0 %v590_v0  ;;  %v551_v16 = vpack.c.bf16 %v230_v15, %v229_v14  ;;  %v323_v17 = vld [vmem:[%s672_s2 + $0x1] ss:$0 sm:$0xff]  ;;  %v324_v21 = vld [vmem:[%s672_s2 + $0x2] ss:$0 sm:$0xff] }
  0x24   :  { %516 = vmatpush3.bf16.msra.mxu1 %v515_v30 }
  0x25   :  { %517 = vmatprep.subr.bf16.mxu1 %v590_v0 }
  0x26   :  { %495 = vmatpush3.bf16.msra.mxu0 %v494_v27 }
  0x27   :  { %496 = vmatprep.subr.bf16.mxu0 %v590_v0 }
  0x28   :  { %519 = vmatpush3.bf16.msra.mxu1 %v518_v36 }
  0x29   :  { %520 = vmatprep.subr.bf16.mxu1 %v590_v0 }
  0x2a   :  { %498 = vmatpush3.bf16.msra.mxu0 %v497_v33 }
  0x2b   :  { %499 = vmatprep.subr.bf16.mxu0 %v590_v0 }
  0x2c   :  { %522 = vmatpush3.bf16.msra.mxu1 %v521_v42 }
  0x2d   :  { %523 = vmatprep.subr.bf16.mxu1 %v590_v0 }
  0x2e   :  { %501 = vmatpush3.bf16.msra.mxu0 %v500_v39 }
  0x2f   :  { %502 = vmatprep.subr.bf16.mxu0 %v590_v0 }
  0x30   :  { %525 = vmatpush3.bf16.msra.mxu1 %v524_v46 }
  0x31   :  { %526 = vmatprep.subr.bf16.mxu1 %v590_v0 }
  0x32   :  { %504 = vmatpush3.bf16.msra.mxu0 %v503_v45 }
  0x33   :  { %529 = vmatprep.subr.bf16.mxu0 %v590_v0 }
  0x34   :  { %528 = vmatpush3.bf16.msra.mxu1 %v527_v50 }
  0x35   :  { %409 = vmatmul.mubr.f32.vlgmr.msra.gmra.mrb[0].mxu0 %v28_v47 }
  0x36   :  { %478 = vmatprep.mubr.msk.f32.mxu0 %vm591_vm0, %v592_v1  ;;  %531 = vmatpush3.bf16.msra.mxu0 %v530_v54  ;;  %v224_v1 = vld [vmem:[#allocation2 + $0x148] sm:$0xff] }
  0x37   :  { %532 = vmatprep.subr.bf16.mxu0 %v590_v0  ;;  %v542_v2 = vpack.c.bf16 %v224_v1, %v223_v63 }
  0x3a   :  { %534 = vmatpush3.bf16.msra.mxu0 %v533_v56 }
  0x3b   :  { %535 = vmatprep.subr.bf16.mxu0 %v590_v0 }
  0x3e   :  { %537 = vmatpush3.bf16.msra.mxu0 %v536_v59 }
  0x3f   :  { %538 = vmatprep.subr.bf16.mxu0 %v590_v0 }
  0x42   :  { %540 = vmatpush3.bf16.msra.mxu0 %v539_v62 }
  0x43   :  { %541 = vmatprep.subr.bf16.mxu0 %v590_v0 }
  0x46   :  { %543 = vmatpush3.bf16.msra.mxu0 %v542_v2 }
  0x47   :  { %544 = vmatprep.subr.bf16.mxu0 %v590_v0 }
  0x4a   :  { %546 = vmatpush3.bf16.msra.mxu0 %v545_v5 }
  0x4b   :  { %547 = vmatprep.subr.bf16.mxu0 %v590_v0 }
  0x4e   :  { %549 = vmatpush3.bf16.msra.mxu0 %v548_v8 }
  0x4f   :  { %550 = vmatprep.subr.bf16.mxu0 %v590_v0 }
  0x52   :  { %552 = vmatpush3.bf16.msra.mxu0 %v551_v16 }
 0x108   :  { %v116_v10 = vpop.f32.mrb[0].mxu0 }
 0x109   :  { %v117_v11 = vadd.f32 %v322_v9, %v116_v10  ;;  %v410_v12 = vpop.f32.mrb[1].mxu0 }
 0x10b   :  { %v120_v13 = vmax.f32 %v117_v11, 0.0 }
 0x10d   :  { %444 = vmatmul.mubr.f32.vlgmr.msra.gmra.mrb[0].mxu1 %v120_v13 }
 0x1e0   :  { %v209_v18 = vpop.f32.mrb[0].mxu1 }
 0x1e1   :  { %v210_v19 = vadd.f32 %v323_v17, %v209_v18  ;;  %v445_v0 = vpop.f32.mrb[1].mxu1 }
 0x1e3   :  { %v213_v20 = vmax.f32 %v210_v19, 0.0 }
 0x1e5   :  { %479 = vmatmul.mubr.f32.vlgmr.msra.gmra.mrb[2].mxu0 %v213_v20 }
 0x2b8   :  { %v302_v22 = vpop.f32.mrb[2].mxu0 }
 0x2b9   :  { %v303_v23 = vadd.f32 %v324_v21, %v302_v22  ;;  %v480_v24 = vpop.f32.mrb[3].mxu0 }
 0x2bb   :  { %306 = vmax.xlane.f32.xlu0 %v303_v23 }
 0x348   :  { %v307_v25 = vpop.xlane.xlu0 %306 }
 0x349   :  { %v308_v26 = vsub.f32 %v303_v23, %v307_v25 }
 0x34b   :  { %v309_v27 = vmul.f32 1.442695, %v308_v26 }
 0x34d   :  { %559 = vpow2.f32 %v309_v27 }
 0x357   :  { %v560_v28 = vpop.eup %559 }
 0x358   :  { %311 = vadd.xlane.f32.xlu0 %v560_v28 }
 0x3e5   :  { %v312_v29 = vpop.xlane.xlu0 %311 }
 0x3e6   :  { %561 = vrcp.f32 %v312_v29 }
 0x3f0   :  { %v562_v30 = vpop.eup %561 }
 0x3f1   :  { %v315_v31 = vmul.f32 %v562_v30, %v560_v28 }
 0x3f3   :  { %316 = vst [vmem:[%s673_s3] sm:$0xff] %v315_v31 }
 0x3f4   :  { %321 = vsyncpa [#allocation3], 1 }

</bundles_post_ra>
